<compile_context>
chip_gen: v5e
topology: v5e:2x2
jax: 0.10.0
libtpu: 0.0.40
codegen_flags: <defaults>
</compile_context>

<pallas_src>
import functools

import jax
import jax.numpy as jnp
from jax.experimental import pallas as pl
from jax.experimental.pallas import tpu as pltpu


# --------------------------------------------------------------------------
# Pallas kernel: single-contraction conv + bias (+ optional residual + ReLU)
# --------------------------------------------------------------------------
def _conv_bias_kernel(relu, has_residual, *refs):
    if has_residual:
        p_ref, w_ref, b_ref, r_ref, o_ref, acc_ref = refs
    else:
        p_ref, w_ref, b_ref, o_ref, acc_ref = refs
        r_ref = None

    k = pl.program_id(3)

    @pl.when(k == 0)
    def _():
        acc_ref[...] = jnp.zeros_like(acc_ref)

    # (TP, TK) @ (TK, TC) -> f32 accumulate (bf16 operands, MXU native)
    acc_ref[...] += jnp.dot(p_ref[0], w_ref[...],
                            preferred_element_type=jnp.float32)

    @pl.when(k == pl.num_programs(3) - 1)
    def _():
        out = acc_ref[...] + b_ref[...]          # folded-BN bias
        if has_residual:
            out = out + r_ref[0].astype(jnp.float32)
        if relu:
            out = jnp.maximum(out, 0.0)
        o_ref[0] = out.astype(o_ref.dtype)


def _pick_tile(dim, candidates):
    for c in candidates:
        if c <= dim and dim % c == 0:
            return c
    return dim


def conv_bias_pallas(patches, w, bias, residual=None, relu=True,
                     out_dtype=jnp.float32):
    """patches: (N, P, K) bf16, w: (K, C) bf16, bias: (1, C) f32,
    residual: (N, P, C) or None.  K and C are multiples of 128."""
    N, P, K = patches.shape
    C = w.shape[-1]

    TP = _pick_tile(P, (512, 256, 128, 64, 32, 16, 8))
    TC = _pick_tile(C, (256, 128))
    TK = _pick_tile(K, (1024, 512, 256, 128))
    grid = (N, P // TP, C // TC, K // TK)

    in_specs = [
        pl.BlockSpec((1, TP, TK), lambda n, i, j, k: (n, i, k)),
        pl.BlockSpec((TK, TC), lambda n, i, j, k: (k, j)),
        pl.BlockSpec((1, TC), lambda n, i, j, k: (0, j)),
    ]
    args = [patches, w, bias]
    if residual is not None:
        in_specs.append(pl.BlockSpec((1, TP, TC), lambda n, i, j, k: (n, i, j)))
        args.append(residual)

    kernel = functools.partial(_conv_bias_kernel, relu, residual is not None)
    return pl.pallas_call(
        kernel,
        out_shape=jax.ShapeDtypeStruct((N, P, C), out_dtype),
        grid=grid,
        in_specs=in_specs,
        out_specs=pl.BlockSpec((1, TP, TC), lambda n, i, j, k: (n, i, j)),
        scratch_shapes=[pltpu.VMEM((TP, TC), jnp.float32)],
        compiler_params=pltpu.CompilerParams(
            dimension_semantics=("parallel", "parallel", "parallel", "arbitrary"),
            vmem_limit_bytes=48 * 1024 * 1024),
    )(*args)


# --------------------------------------------------------------------------
# Plain-JAX glue: im2col (taps folded into channel axis), padding, BN folding
# --------------------------------------------------------------------------
def _im2col_3x3(x_nhwc, stride):
    """x_nhwc: (N,H,W,C) -> (N, Ho*Wo, 9*C), Ho, Wo   (pad=1, ksize=3)."""
    N, H, W, C = x_nhwc.shape
    Ho = (H + 2 - 3) // stride + 1
    Wo = (W + 2 - 3) // stride + 1
    xp = jnp.pad(x_nhwc, ((0, 0), (1, 1), (1, 1), (0, 0)))
    cols = []
    for ky in range(3):
        for kx in range(3):
            cols.append(xp[:, ky:ky + stride * (Ho - 1) + 1:stride,
                              kx:kx + stride * (Wo - 1) + 1:stride, :])
    patches = jnp.concatenate(cols, axis=-1)               # (N, Ho, Wo, 9*C)
    return patches.reshape(N, Ho * Wo, 9 * C), Ho, Wo


def _pad_last(a, target):
    pad = target - a.shape[-1]
    if pad == 0:
        return a
    return jnp.pad(a, [(0, 0)] * (a.ndim - 1) + [(0, pad)])


def _round_up(x, m):
    return (x + m - 1) // m * m


def _bn_fold(bn_params, eps):
    gamma, beta, mean, var = bn_params
    scale = gamma / jnp.sqrt(var + eps)
    bias = beta - mean * scale
    return scale, bias


# --------------------------------------------------------------------------
# BasicBlock module (parameters initialized deterministically in-script)
# --------------------------------------------------------------------------
class BasicBlockPallas:
    expansion = 1

    def __init__(self, in_planes, planes, stride=1, key=None, eps=1e-5,
                 compute_dtype=jnp.bfloat16):
        self.in_planes, self.planes = in_planes, planes
        self.stride, self.eps, self.cdt = stride, eps, compute_dtype
        keys = jax.random.split(key, 6)

        def conv_init(k, cout, cin, kh, kw):
            fan_in = cin * kh * kw
            return jax.random.normal(k, (cout, cin, kh, kw), jnp.float32) / jnp.sqrt(fan_in)

        def bn_init(k):
            k1, k2, k3, k4 = jax.random.split(k, 4)
            gamma = 1.0 + 0.1 * jax.random.normal(k1, (planes,), jnp.float32)
            beta = 0.05 * jax.random.normal(k2, (planes,), jnp.float32)
            mean = 0.1 * jax.random.normal(k3, (planes,), jnp.float32)
            var = jax.random.uniform(k4, (planes,), jnp.float32, minval=0.5, maxval=1.5)
            return gamma, beta, mean, var

        self.w1, self.bn1 = conv_init(keys[0], planes, in_planes, 3, 3), bn_init(keys[1])
        self.w2, self.bn2 = conv_init(keys[2], planes, planes, 3, 3), bn_init(keys[3])
        self.has_proj = (stride != 1) or (in_planes != self.expansion * planes)
        if self.has_proj:
            self.w_sc, self.bn_sc = conv_init(keys[4], planes, in_planes, 1, 1), bn_init(keys[5])

        # ----- Pallas-format params: BN scale folded into weights, channels
        # ----- padded to lane-dense multiples of 128, stored in bf16.
        self.cin_pad = _round_up(in_planes, 128)
        self.planes_pad = _round_up(planes, 128)

        s1, b1 = _bn_fold(self.bn1, eps)
        s2, b2 = _bn_fold(self.bn2, eps)

        # conv1: (Cout,Cin,3,3) -> (3,3,Cin,Cout)*scale -> (9*Cin_pad? no, pad K) x Cout_pad
        w1_t = jnp.transpose(self.w1, (2, 3, 1, 0)) * s1            # (3,3,Cin,planes)
        w1_flat = w1_t.reshape(9 * in_planes, planes)
        self.k1_pad = _round_up(9 * in_planes, 128)
        self.w1_k = jnp.pad(w1_flat, ((0, self.k1_pad - 9 * in_planes),
                                      (0, self.planes_pad - planes))).astype(compute_dtype)
        self.b1_k = jnp.pad(b1, (0, self.planes_pad - planes)).reshape(1, -1)

        # conv2 (+ fused 1x1 projection shortcut as extra K rows)
        w2_t = jnp.transpose(self.w2, (2, 3, 1, 0)) * s2             # (3,3,planes,planes)
        w2_p = jnp.pad(w2_t, ((0, 0), (0, 0),
                              (0, self.planes_pad - planes),
                              (0, self.planes_pad - planes)))
        w2_flat = w2_p.reshape(9 * self.planes_pad, self.planes_pad)
        b2_p = jnp.pad(b2, (0, self.planes_pad - planes))
        if self.has_proj:
            ssc, bsc = _bn_fold(self.bn_sc, eps)
            wsc_t = jnp.transpose(self.w_sc[:, :, 0, 0], (1, 0)) * ssc   # (Cin, planes)
            wsc_p = jnp.pad(wsc_t, ((0, self.cin_pad - in_planes),
                                    (0, self.planes_pad - planes)))
            w2_flat = jnp.concatenate([w2_flat, wsc_p], axis=0)
            b2_p = b2_p + jnp.pad(bsc, (0, self.planes_pad - planes))
        self.w2_k = w2_flat.astype(compute_dtype)
        self.b2_k = b2_p.reshape(1, -1)

    def __call__(self, x_nchw):
        N = x_nchw.shape[0]
        x = jnp.transpose(x_nchw, (0, 2, 3, 1)).astype(self.cdt)     # NCHW -> NHWC, bf16

        # conv1 (3x3, stride) + bn1 + relu : one K = 9*Cin contraction
        patches1, Ho, Wo = _im2col_3x3(x, self.stride)
        patches1 = _pad_last(patches1, self.k1_pad)
        out1 = conv_bias_pallas(patches1, self.w1_k, self.b1_k,
                                relu=True, out_dtype=self.cdt)       # (N, P, planes_pad)

        # conv2 (3x3, s=1) + bn2 + shortcut + relu (all fused in one kernel)
        out1_nhwc = out1.reshape(N, Ho, Wo, self.planes_pad)
        patches2, _, _ = _im2col_3x3(out1_nhwc, 1)                   # (N, P, 9*planes_pad)
        if self.has_proj:
            xd = x[:, ::self.stride, ::self.stride, :].reshape(N, Ho * Wo, self.in_planes)
            patches2 = jnp.concatenate([patches2, _pad_last(xd, self.cin_pad)], axis=-1)
            residual = None                                          # fused into the matmul
        else:
            residual = _pad_last(x.reshape(N, Ho * Wo, self.in_planes), self.planes_pad)
        out = conv_bias_pallas(patches2, self.w2_k, self.b2_k, residual=residual,
                               relu=True, out_dtype=jnp.float32)

        out = out[:, :, :self.planes].reshape(N, Ho, Wo, self.planes)
        return jnp.transpose(out, (0, 3, 1, 2))                      # NHWC -> NCHW

    # pure-JAX f32 reference (NCHW) for verification
    def reference(self, x):
        def conv(x, w, s, pad):
            return jax.lax.conv_general_dilated(
                x, w, (s, s), [(pad, pad), (pad, pad)],
                dimension_numbers=("NCHW", "OIHW", "NCHW"))

        def bn(x, p):
            g, b, m, v = (t[None, :, None, None] for t in p)
            return (x - m) / jnp.sqrt(v + self.eps) * g + b

        out = jax.nn.relu(bn(conv(x, self.w1, self.stride, 1), self.bn1))
        out = bn(conv(out, self.w2, 1, 1), self.bn2)
        sc = bn(conv(x, self.w_sc, self.stride, 0), self.bn_sc) if self.has_proj else x
        return jax.nn.relu(out + sc)


def _check(block, x, tag):
    out = jax.block_until_ready(jax.jit(lambda a: block(a))(x))
    ref = block.reference(x)
    assert out.shape == ref.shape
    err = float(jnp.max(jnp.abs(out - ref)))
    scale = float(jnp.max(jnp.abs(ref))) + 1e-6
    if err > 5e-2 * scale:     # bf16 operands / f32 accumulation tolerance
        raise AssertionError(f"{tag}: max abs err {err:.4e} vs scale {scale:.4e}")


if __name__ == "__main__":
    key = jax.random.PRNGKey(0)
    kx1, kp1, kx2, kp2 = jax.random.split(key, 4)

    # projection-shortcut case (stride 2, channel change)
    N, Cin, H, W, planes, stride = 2, 4, 16, 16, 8, 2
    x1 = jax.random.normal(kx1, (N, Cin, H, W), jnp.float32)
    blk1 = BasicBlockPallas(Cin, planes, stride=stride, key=kp1)
    _check(blk1, x1, "proj")

    # identity-shortcut case (stride 1, same channels)
    x2 = jax.random.normal(kx2, (2, 8, 8, 8), jnp.float32)
    blk2 = BasicBlockPallas(8, 8, stride=1, key=kp2)
    _check(blk2, x2, "identity")

    print("KERNEL_OK")
</pallas_src>

<mosaic_0001>
module attributes {stable_mosaic.version = 11 : i64} {
  func.func @_conv_bias_kernel(%arg0: i32, %arg1: i32, %arg2: i32, %arg3: i32, %arg4: memref<1x64x128xbf16, #tpu.memory_space<vmem>>, %arg5: memref<128x128xbf16, #tpu.memory_space<vmem>>, %arg6: memref<1x128xf32, #tpu.memory_space<vmem>>, %arg7: memref<1x64x128xbf16, #tpu.memory_space<vmem>>, %arg8: memref<64x128xf32, #tpu.memory_space<vmem>>) attributes {dimension_semantics = [#tpu.dimension_semantics<parallel>, #tpu.dimension_semantics<parallel>, #tpu.dimension_semantics<parallel>, #tpu.dimension_semantics<arbitrary>], iteration_bounds = array<i64: 2, 1, 1, 1>, scalar_prefetch = 0 : i64, scratch_operands = 1 : i64, tpu.core_type = #tpu.core_type<tc>, window_params = [{transform_indices = @transform_0, window_bounds = array<i64: 1, 64, 128>}, {transform_indices = @transform_1, window_bounds = array<i64: 128, 128>}, {transform_indices = @transform_2, window_bounds = array<i64: 1, 128>}, {transform_indices = @transform_3, window_bounds = array<i64: 1, 64, 128>}]} {
    %c0_i32 = arith.constant 0 : i32
    %0 = arith.cmpi eq, %arg3, %c0_i32 : i32
    %1 = arith.extui %0 : i1 to i32
    %c0_i32_0 = arith.constant 0 : i32
    %2 = arith.cmpi ne, %1, %c0_i32_0 : i32
    scf.if %2 {
      %cst_11 = arith.constant 0.000000e+00 : f32
      %13 = vector.broadcast %cst_11 : f32 to vector<64x128xf32>
      %c0_12 = arith.constant 0 : index
      %c0_13 = arith.constant 0 : index
      %14 = vector.load %arg8[%c0_12, %c0_13] : memref<64x128xf32, #tpu.memory_space<vmem>>, vector<64x128xf32>
      tpu.vector_store %arg8[%c0_12, %c0_13], %13 {strides = array<i32>} : memref<64x128xf32, #tpu.memory_space<vmem>>, vector<64x128xf32>,
    } else {
    }
    %c0 = arith.constant 0 : index
    %c0_1 = arith.constant 0 : index
    %3 = vector.load %arg8[%c0, %c0_1] : memref<64x128xf32, #tpu.memory_space<vmem>>, vector<64x128xf32>
    %c0_2 = arith.constant 0 : index
    %c0_3 = arith.constant 0 : index
    %c0_4 = arith.constant 0 : index
    %4 = vector.load %arg4[%c0_2, %c0_3, %c0_4] : memref<1x64x128xbf16, #tpu.memory_space<vmem>>, vector<1x64x128xbf16>
    %5 = vector.shape_cast %4 : vector<1x64x128xbf16> to vector<64x128xbf16>
    %c0_5 = arith.constant 0 : index
    %c0_6 = arith.constant 0 : index
    %6 = vector.load %arg5[%c0_5, %c0_6] : memref<128x128xbf16, #tpu.memory_space<vmem>>, vector<128x128xbf16>
    %cst = arith.constant dense<0.000000e+00> : vector<64x128xf32>
    %7 = tpu.matmul %5, %6, %cst {dimension_numbers = #tpu.dot_dimension_numbers<[1], [0], [0], [1], [0, 0, 1, 1], [], []>} : vector<64x128xbf16>, vector<128x128xbf16>, vector<64x128xf32> -> vector<64x128xf32>
    %8 = arith.addf %3, %7 : vector<64x128xf32>
    %c0_7 = arith.constant 0 : index
    %c0_8 = arith.constant 0 : index
    %9 = vector.load %arg8[%c0_7, %c0_8] : memref<64x128xf32, #tpu.memory_space<vmem>>, vector<64x128xf32>
    tpu.vector_store %arg8[%c0_7, %c0_8], %8 {strides = array<i32>} : memref<64x128xf32, #tpu.memory_space<vmem>>, vector<64x128xf32>,
    %c0_i32_9 = arith.constant 0 : i32
    %10 = arith.cmpi eq, %arg3, %c0_i32_9 : i32
    %11 = arith.extui %10 : i1 to i32
    %c0_i32_10 = arith.constant 0 : i32
    %12 = arith.cmpi ne, %11, %c0_i32_10 : i32
    scf.if %12 {
      %c0_11 = arith.constant 0 : index
      %c0_12 = arith.constant 0 : index
      %13 = vector.load %arg8[%c0_11, %c0_12] : memref<64x128xf32, #tpu.memory_space<vmem>>, vector<64x128xf32>
      %c0_13 = arith.constant 0 : index
      %c0_14 = arith.constant 0 : index
      %14 = vector.load %arg6[%c0_13, %c0_14] : memref<1x128xf32, #tpu.memory_space<vmem>>, vector<1x128xf32>
      %15 = vector.broadcast %14 : vector<1x128xf32> to vector<64x128xf32>
      %16 = arith.addf %13, %15 : vector<64x128xf32>
      %cst_15 = arith.constant 0.000000e+00 : f32
      %17 = vector.broadcast %cst_15 : f32 to vector<64x128xf32>
      %18 = arith.maximumf %16, %17 : vector<64x128xf32>
      %19 = arith.truncf %18 : vector<64x128xf32> to vector<64x128xbf16>
      %c0_16 = arith.constant 0 : index
      %c0_17 = arith.constant 0 : index
      %c0_18 = arith.constant 0 : index
      %20 = vector.load %arg7[%c0_16, %c0_17, %c0_18] : memref<1x64x128xbf16, #tpu.memory_space<vmem>>, vector<1x64x128xbf16>
      %21 = vector.shape_cast %20 : vector<1x64x128xbf16> to vector<64x128xbf16>
      %22 = vector.shape_cast %19 : vector<64x128xbf16> to vector<1x64x128xbf16>
      tpu.vector_store %arg7[%c0_16, %c0_17, %c0_18], %22 {strides = array<i32>} : memref<1x64x128xbf16, #tpu.memory_space<vmem>>, vector<1x64x128xbf16>,
    } else {
    }
    return
  }
  func.func @transform_0(%arg0: i32, %arg1: i32, %arg2: i32, %arg3: i32) -> (i32, i32, i32) {
    %c0_i32 = arith.constant 0 : i32
    return %arg0, %arg1, %arg3 : i32, i32, i32
  }
  func.func @transform_1(%arg0: i32, %arg1: i32, %arg2: i32, %arg3: i32) -> (i32, i32) {
    %c0_i32 = arith.constant 0 : i32
    return %arg3, %arg2 : i32, i32
  }
  func.func @transform_2(%arg0: i32, %arg1: i32, %arg2: i32, %arg3: i32) -> (i32, i32) {
    %c0_i32 = arith.constant 0 : i32
    %c0_i32_0 = arith.constant 0 : i32
    return %c0_i32, %arg2 : i32, i32
  }
  func.func @transform_3(%arg0: i32, %arg1: i32, %arg2: i32, %arg3: i32) -> (i32, i32, i32) {
    %c0_i32 = arith.constant 0 : i32
    return %arg0, %arg1, %arg2 : i32, i32, i32
  }
}

module attributes {stable_mosaic.version = 11 : i64} {
  func.func @_conv_bias_kernel(%arg0: i32, %arg1: i32, %arg2: i32, %arg3: i32, %arg4: memref<1x64x256xbf16, #tpu.memory_space<vmem>>, %arg5: memref<256x128xbf16, #tpu.memory_space<vmem>>, %arg6: memref<1x128xf32, #tpu.memory_space<vmem>>, %arg7: memref<1x64x128xf32, #tpu.memory_space<vmem>>, %arg8: memref<64x128xf32, #tpu.memory_space<vmem>>) attributes {dimension_semantics = [#tpu.dimension_semantics<parallel>, #tpu.dimension_semantics<parallel>, #tpu.dimension_semantics<parallel>, #tpu.dimension_semantics<arbitrary>], iteration_bounds = array<i64: 2, 1, 1, 5>, scalar_prefetch = 0 : i64, scratch_operands = 1 : i64, tpu.core_type = #tpu.core_type<tc>, window_params = [{transform_indices = @transform_0, window_bounds = array<i64: 1, 64, 256>}, {transform_indices = @transform_1, window_bounds = array<i64: 256, 128>}, {transform_indices = @transform_2, window_bounds = array<i64: 1, 128>}, {transform_indices = @transform_3, window_bounds = array<i64: 1, 64, 128>}]} {
    %c0_i32 = arith.constant 0 : i32
    %0 = arith.cmpi eq, %arg3, %c0_i32 : i32
    %1 = arith.extui %0 : i1 to i32
    %c0_i32_0 = arith.constant 0 : i32
    %2 = arith.cmpi ne, %1, %c0_i32_0 : i32
    scf.if %2 {
      %cst_10 = arith.constant 0.000000e+00 : f32
      %13 = vector.broadcast %cst_10 : f32 to vector<64x128xf32>
      %c0_11 = arith.constant 0 : index
      %c0_12 = arith.constant 0 : index
      %14 = vector.load %arg8[%c0_11, %c0_12] : memref<64x128xf32, #tpu.memory_space<vmem>>, vector<64x128xf32>
      tpu.vector_store %arg8[%c0_11, %c0_12], %13 {strides = array<i32>} : memref<64x128xf32, #tpu.memory_space<vmem>>, vector<64x128xf32>,
    } else {
    }
    %c0 = arith.constant 0 : index
    %c0_1 = arith.constant 0 : index
    %3 = vector.load %arg8[%c0, %c0_1] : memref<64x128xf32, #tpu.memory_space<vmem>>, vector<64x128xf32>
    %c0_2 = arith.constant 0 : index
    %c0_3 = arith.constant 0 : index
    %c0_4 = arith.constant 0 : index
    %4 = vector.load %arg4[%c0_2, %c0_3, %c0_4] : memref<1x64x256xbf16, #tpu.memory_space<vmem>>, vector<1x64x256xbf16>
    %5 = vector.shape_cast %4 : vector<1x64x256xbf16> to vector<64x256xbf16>
    %c0_5 = arith.constant 0 : index
    %c0_6 = arith.constant 0 : index
    %6 = vector.load %arg5[%c0_5, %c0_6] : memref<256x128xbf16, #tpu.memory_space<vmem>>, vector<256x128xbf16>
    %cst = arith.constant dense<0.000000e+00> : vector<64x128xf32>
    %7 = tpu.matmul %5, %6, %cst {dimension_numbers = #tpu.dot_dimension_numbers<[1], [0], [0], [1], [0, 0, 1, 1], [], []>} : vector<64x256xbf16>, vector<256x128xbf16>, vector<64x128xf32> -> vector<64x128xf32>
    %8 = arith.addf %3, %7 : vector<64x128xf32>
    %c0_7 = arith.constant 0 : index
    %c0_8 = arith.constant 0 : index
    %9 = vector.load %arg8[%c0_7, %c0_8] : memref<64x128xf32, #tpu.memory_space<vmem>>, vector<64x128xf32>
    tpu.vector_store %arg8[%c0_7, %c0_8], %8 {strides = array<i32>} : memref<64x128xf32, #tpu.memory_space<vmem>>, vector<64x128xf32>,
    %c4_i32 = arith.constant 4 : i32
    %10 = arith.cmpi eq, %arg3, %c4_i32 : i32
    %11 = arith.extui %10 : i1 to i32
    %c0_i32_9 = arith.constant 0 : i32
    %12 = arith.cmpi ne, %11, %c0_i32_9 : i32
    scf.if %12 {
      %c0_10 = arith.constant 0 : index
      %c0_11 = arith.constant 0 : index
      %13 = vector.load %arg8[%c0_10, %c0_11] : memref<64x128xf32, #tpu.memory_space<vmem>>, vector<64x128xf32>
      %c0_12 = arith.constant 0 : index
      %c0_13 = arith.constant 0 : index
      %14 = vector.load %arg6[%c0_12, %c0_13] : memref<1x128xf32, #tpu.memory_space<vmem>>, vector<1x128xf32>
      %15 = vector.broadcast %14 : vector<1x128xf32> to vector<64x128xf32>
      %16 = arith.addf %13, %15 : vector<64x128xf32>
      %cst_14 = arith.constant 0.000000e+00 : f32
      %17 = vector.broadcast %cst_14 : f32 to vector<64x128xf32>
      %18 = arith.maximumf %16, %17 : vector<64x128xf32>
      %c0_15 = arith.constant 0 : index
      %c0_16 = arith.constant 0 : index
      %c0_17 = arith.constant 0 : index
      %19 = vector.load %arg7[%c0_15, %c0_16, %c0_17] : memref<1x64x128xf32, #tpu.memory_space<vmem>>, vector<1x64x128xf32>
      %20 = vector.shape_cast %19 : vector<1x64x128xf32> to vector<64x128xf32>
      %21 = vector.shape_cast %18 : vector<64x128xf32> to vector<1x64x128xf32>
      tpu.vector_store %arg7[%c0_15, %c0_16, %c0_17], %21 {strides = array<i32>} : memref<1x64x128xf32, #tpu.memory_space<vmem>>, vector<1x64x128xf32>,
    } else {
    }
    return
  }
  func.func @transform_0(%arg0: i32, %arg1: i32, %arg2: i32, %arg3: i32) -> (i32, i32, i32) {
    %c0_i32 = arith.constant 0 : i32
    return %arg0, %arg1, %arg3 : i32, i32, i32
  }
  func.func @transform_1(%arg0: i32, %arg1: i32, %arg2: i32, %arg3: i32) -> (i32, i32) {
    %c0_i32 = arith.constant 0 : i32
    return %arg3, %arg2 : i32, i32
  }
  func.func @transform_2(%arg0: i32, %arg1: i32, %arg2: i32, %arg3: i32) -> (i32, i32) {
    %c0_i32 = arith.constant 0 : i32
    %c0_i32_0 = arith.constant 0 : i32
    return %c0_i32, %arg2 : i32, i32
  }
  func.func @transform_3(%arg0: i32, %arg1: i32, %arg2: i32, %arg3: i32) -> (i32, i32, i32) {
    %c0_i32 = arith.constant 0 : i32
    return %arg0, %arg1, %arg2 : i32, i32, i32
  }
}

</mosaic_0001>

<bundles_post_ra>
// kernel: _lambda_.2
= control target key start
LH: loop header
LB: loop body
LE: loop exit
PB: predicated region body
PF: predicated region fallthrough
CT: control target
= control target key end

     0   :  { %s825_s12 = smov 0   ;;  %s827_s13 = smov 0   ;;  %s896_s0 = inlined_call_operand.vmem [shape: bf16[2,64,128], index: 0, kind: input, shape index: {}]   ;;  %s897_s1 = inlined_call_operand.vmem [shape: bf16[128,128], index: 1, kind: input, shape index: {}]   ;;  %s898_s2 = inlined_call_operand.vmem [shape: f32[1,128], index: 2, kind: input, shape index: {}]   ;;  %s899_s3 = inlined_call_operand.vmem [shape: bf16[2,64,128], index: 3, kind: output, shape index: {}]  }
   0x1   :  { %s829_s14 = smov 0  }
   0x2 LB: > { %s39_s15 = sadd.s32 1, %s799_s13  ;;  %p640_p0 = scmp.ge.s32.totalorder %s803_s14, 1  ;;  %s803_s14 = sphi %s829_s14, %s13_s14   ;;  %s799_s13 = sphi %s827_s13, %s901_s13   ;;  %s795_s12 = sphi %s825_s12, %s900_s12  }
   0x3   : > { %p41_p1 = scmp.ge.s32.totalorder %s39_s15, 2  ;;  %p203_p2 = scmp.lt.s32.totalorder %s803_s14, 3 }
   0x5   : > { %s903_s15 = smov (%p41_p1, %s39_s15), 0  ;;  %p204_p3 = pnand %p640_p0, %p203_p2 }
   0x6   : > { %p253_p4 = scmp.lt.s32.totalorder (!%p204_p3), %s795_s12, 1 }
   0x7   : > { %207 = sbr.rel (%p204_p3) target bundleno = 193 (0xc1), region = 32 }
   0xc   : > { %v708_v0 = vld [vmem:[%s897_s1 + $0x38] sm:$0xff]  ;;  %v707_v1 = vld [vmem:[%s897_s1 + $0x30] sm:$0xff]  ;;  %v706_v2 = vld [vmem:[%s897_s1 + $0x28] sm:$0xff]  ;;  %s905_s12 = smov (!%p253_p4, %s795_s12), 1 }
   0xd   : > { %406 = vmatpush.bf16.msra.mxu0 %v708_v0  ;;  %732 = vmatpush.bf16.msra.mxu1 %v708_v0  ;;  %v705_v3 = vld [vmem:[%s897_s1 + $0x20] sm:$0xff]  ;;  %v704_v4 = vld [vmem:[%s897_s1 + $0x18] sm:$0xff]  ;;  %v703_v5 = vld [vmem:[%s897_s1 + $0x10] sm:$0xff]  ;;  %s695_s30 = sshll.u32 %s905_s12, 5 }
   0xe   : > { %733 = vmatpush.bf16.msra.mxu2 %v708_v0  ;;  %734 = vmatpush.bf16.msra.mxu3 %v708_v0  ;;  %v702_v6 = vld [vmem:[%s897_s1 + $0x8] sm:$0xff]  ;;  %v701_v7 = vld [vmem:[%s897_s1] sm:$0xff]  ;;  %s263_s8 = scalar_lea.vmem %s896_s0, %s695_s30  ;;  %s288_s17 = scalar_lea.vmem %s899_s3, %s695_s30 }
   0xf   : > { %v697_v8 = vld [vmem:[%s263_s8] sm:$0xff]  ;;  %v698_v9 = vld [vmem:[%s263_s8 + $0x8] sm:$0xff]  ;;  %v699_v10 = vld [vmem:[%s263_s8 + $0x10] sm:$0xff] }
  0x10   : > { %v700_v11 = vld [vmem:[%s263_s8 + $0x18] sm:$0xff]  ;;  %v780_v14 = vld [vmem:[%s898_s2] ss:$0 sm:$0xff] }
  0x11   : > { %407 = vmatpush.bf16.msra.mxu0 %v707_v1  ;;  %735 = vmatpush.bf16.msra.mxu1 %v707_v1 }
  0x12   : > { %736 = vmatpush.bf16.msra.mxu2 %v707_v1  ;;  %737 = vmatpush.bf16.msra.mxu3 %v707_v1 }
  0x15   : > { %408 = vmatpush.bf16.msra.mxu0 %v706_v2  ;;  %738 = vmatpush.bf16.msra.mxu1 %v706_v2 }
  0x16   : > { %739 = vmatpush.bf16.msra.mxu2 %v706_v2  ;;  %740 = vmatpush.bf16.msra.mxu3 %v706_v2 }
  0x19   : > { %409 = vmatpush.bf16.msra.mxu0 %v705_v3  ;;  %741 = vmatpush.bf16.msra.mxu1 %v705_v3 }
  0x1a   : > { %742 = vmatpush.bf16.msra.mxu2 %v705_v3  ;;  %743 = vmatpush.bf16.msra.mxu3 %v705_v3 }
  0x1d   : > { %410 = vmatpush.bf16.msra.mxu0 %v704_v4  ;;  %744 = vmatpush.bf16.msra.mxu1 %v704_v4 }
  0x1e   : > { %745 = vmatpush.bf16.msra.mxu2 %v704_v4  ;;  %746 = vmatpush.bf16.msra.mxu3 %v704_v4 }
  0x21   : > { %411 = vmatpush.bf16.msra.mxu0 %v703_v5  ;;  %747 = vmatpush.bf16.msra.mxu1 %v703_v5 }
  0x22   : > { %748 = vmatpush.bf16.msra.mxu2 %v703_v5  ;;  %749 = vmatpush.bf16.msra.mxu3 %v703_v5 }
  0x25   : > { %412 = vmatpush.bf16.msra.mxu0 %v702_v6  ;;  %750 = vmatpush.bf16.msra.mxu1 %v702_v6 }
  0x26   : > { %751 = vmatpush.bf16.msra.mxu2 %v702_v6  ;;  %752 = vmatpush.bf16.msra.mxu3 %v702_v6 }
  0x29   : > { %413 = vmatpush.bf16.msra.mxu0 %v701_v7  ;;  %753 = vmatpush.bf16.msra.mxu1 %v701_v7 }
  0x2a   : > { %754 = vmatpush.bf16.msra.mxu2 %v701_v7  ;;  %755 = vmatpush.bf16.msra.mxu3 %v701_v7 }
  0x2c   : > { %414 = vmatmul.bf16.vlgmr.msra.gmra.mxu0 %v697_v8  ;;  %419 = vmatmul.bf16.vlgmr.msra.gmra.mxu1 %v698_v9 }
  0x2d   : > { %424 = vmatmul.bf16.vlgmr.msra.gmra.mxu2 %v699_v10  ;;  %429 = vmatmul.bf16.vlgmr.msra.gmra.mxu3 %v700_v11 }
  0xa9   : > { %v415_v12 = vpop.f32.mrf.mxu0  ;;  %v420_v13 = vpop.f32.mrf.mxu1 }
  0xaa   : > { %v466_v15 = vadd.f32 %v780_v14, %v415_v12  ;;  %v468_v16 = vadd.f32 %v780_v14, %v420_v13 }
  0xac   : > { %v474_v23 = vmax.f32 %v466_v15, 0.0  ;;  %v476_v24 = vmax.f32 %v468_v16, 0.0 }
  0xb0   : > { %v425_v17 = vpop.f32.mrf.mxu2  ;;  %v430_v18 = vpop.f32.mrf.mxu3 }
  0xb1   : > { %v417_v19 = vpop.f32.mrf.mxu0  ;;  %v422_v20 = vpop.f32.mrf.mxu1  ;;  %v470_v29 = vadd.f32 %v780_v14, %v425_v17  ;;  %v472_v30 = vadd.f32 %v780_v14, %v430_v18 }
  0xb2   : > { %v467_v21 = vadd.f32 %v780_v14, %v417_v19  ;;  %v469_v22 = vadd.f32 %v780_v14, %v422_v20 }
  0xb3   : > { %v478_v35 = vmax.f32 %v470_v29, 0.0  ;;  %v480_v36 = vmax.f32 %v472_v30, 0.0 }
  0xb4   : > { %v475_v25 = vmax.f32 %v467_v21, 0.0  ;;  %v477_v26 = vmax.f32 %v469_v22, 0.0 }
  0xb6   : > { %v712_v27 = vpack.c.bf16 %v475_v25, %v474_v23  ;;  %v717_v28 = vpack.c.bf16 %v477_v26, %v476_v24 }
  0xb8   : > { %713 = vst [vmem:[%s288_s17] sm:$0xff] %v712_v27   ;;  %v427_v31 = vpop.f32.mrf.mxu2  ;;  %v432_v32 = vpop.f32.mrf.mxu3 }
  0xb9   : > { %729 = vst [vmem:[%s288_s17 + $0x8] sm:$0xff] %v717_v28   ;;  %v471_v33 = vadd.f32 %v780_v14, %v427_v31  ;;  %v473_v34 = vadd.f32 %v780_v14, %v432_v32 }
  0xbb   : > { %v479_v37 = vmax.f32 %v471_v33, 0.0  ;;  %v481_v38 = vmax.f32 %v473_v34, 0.0 }
  0xbd   : > { %v722_v39 = vpack.c.bf16 %v479_v37, %v478_v35  ;;  %v727_v40 = vpack.c.bf16 %v481_v38, %v480_v36 }
  0xbf   : > { %730 = vst [vmem:[%s288_s17 + $0x10] sm:$0xff] %v722_v39  }
  0xc0   : > { %731 = vst [vmem:[%s288_s17 + $0x18] sm:$0xff] %v727_v40  }
  0xc1 PF: > { %s13_s14 = sadd.s32 1, %s803_s14   ;;  %s900_s12 = smov %s799_s13 }
  0xc2   : > { %p10_p5 = scmp.ge.s32.totalorder %s13_s14, 4   ;;  %s901_s13 = smov %s903_s15 }
  0xc4   :  { %12 = sbr.rel (!%p10_p5) target bundleno = 2 (0x2), region = 76 }

// kernel: _lambda_.3
= control target key start
LH: loop header
LB: loop body
LE: loop exit
PB: predicated region body
PF: predicated region fallthrough
CT: control target
= control target key end

     0   :  { %s1077_s12 = smov 0   ;;  %s1079_s13 = smov 0   ;;  %s1221_s0 = inlined_call_operand.vmem [shape: bf16[2,64,1280], index: 0, kind: input, shape index: {}]   ;;  %s1222_s1 = inlined_call_operand.vmem [shape: bf16[1280,128], index: 1, kind: input, shape index: {}]   ;;  %s1223_s2 = inlined_call_operand.vmem [shape: f32[1,128], index: 2, kind: input, shape index: {}]   ;;  %s1224_s3 = inlined_call_operand.vmem [shape: f32[2,64,128], index: 3, kind: output, shape index: {}]  }
   0x1   :  { %s1081_s14 = smov 0   ;;  %s1083_s15 = smov 0  }
   0x2   :  { %s1085_s16 = smov 0   ;;  %s1087_s17 = smov 0  }
   0x3   :  { %s1089_s18 = smov 0  }
   0x4 LB: > { %s28_s19 = sadd.s32 1, %s1046_s16  ;;  %s39_s20 = sadd.s32 1, %s1050_s17  ;;  %s1054_s18 = sphi %s1089_s18, %s13_s18   ;;  %s1050_s17 = sphi %s1087_s17, %s1230_s17   ;;  %s1046_s16 = sphi %s1085_s16, %s1229_s16   ;;  %s1042_s15 = sphi %s1083_s15, %s1228_s15   ;;  %s1038_s14 = sphi %s1081_s14, %s1227_s14   ;;  %s1034_s13 = sphi %s1079_s13, %s1226_s13   ;;  %s1030_s12 = sphi %s1077_s12, %s1225_s12  }
   0x5   : > { %p29_p0 = scmp.ge.s32.totalorder %s28_s19, 5  ;;  %p57_p1 = scmp.ne.s32.totalorder %s1034_s13, %s1030_s12 }
   0x6   : > { %p58_p2 = scmp.eq.s32.totalorder %s1054_s18, 0  ;;  %s50_s24 = sadd.s32 1, %s1034_s13 }
   0x7   : > { %s1232_s19 = smov (%p29_p0, %s28_s19), 0  ;;  %s1234_s20 = smov (!%p29_p0, %s39_s20), %s1050_s17 }
   0x8   : > { %p59_p3 = por %p58_p2, %p57_p1  ;;  %p41_p4 = scmp.ge.s32.totalorder %s1234_s20, 2 }
   0x9   : > { %s46_s21 = ssub.s32 %s1046_s16, %s1232_s19  ;;  %p790_p6 = scmp.ge.s32.totalorder %s1054_s18, 10 }
   0xa   : > { %s1236_s20 = smov (%p41_p4, %s1234_s20), 0 }
   0xb   : > { %s43_s22 = ssub.s32 %s1050_s17, %s1236_s20  ;;  %173 = sbr.rel (%p790_p6) target bundleno = 32 (0x20), region = 20 }
   0xc   : > { %s47_s23 = sor.u32 %s46_s21, %s43_s22 }
   0xd   : > { %p48_p5 = scmp.eq.s32.totalorder %s47_s23, 0 }
   0xf   : > { %s1128_s25 = scalar_select %p48_p5, %s1034_s13, %s50_s24  }
  0x10   : > { %176 = sbr.rel (!%p59_p3) target bundleno = 32 (0x20), region = 24  ;;  %s178_s26 = sand.u32 (%p59_p3), 1, %s1034_s13  }
  0x11   : > { %s792_s27 = sshll.u32 (%p59_p3), %s1046_s16, 1  ;;  %s791_s28 = sshll.u32 (%p59_p3), %s178_s26, 6 }
  0x12   : > { %s941_s29 = smul.u32 (%p59_p3), 80, %s1050_s17  ;;  %s180_s8 = scalar_lea.vmem (%p59_p3), [#allocation3], %s791_s28 }
  0x14   : > { %s186_s30 = sadd.s32 (%p59_p3), %s941_s29, %s792_s27 }
  0x15   : > { %s793_s4 = sshll.u32 %s186_s30, 2 }
  0x16   : > { %s188_s7 = scalar_lea.vmem %s1221_s0, %s793_s4 }
  0x17   : > { %v231_v0 = vld [vmem:[%s188_s7] sm:$0xff]  ;;  %v233_v1 = vld [vmem:[%s188_s7 + $0x28] sm:$0xff]  ;;  %v235_v2 = vld [vmem:[%s188_s7 + $0x50] sm:$0xff] }
  0x18   : > { %232 = vst [vmem:[%s180_s8] sm:$0xff] %v231_v0  ;;  %v237_v3 = vld [vmem:[%s188_s7 + $0x78] sm:$0xff]  ;;  %v239_v4 = vld [vmem:[%s188_s7 + $0xa0] sm:$0xff]  ;;  %v241_v5 = vld [vmem:[%s188_s7 + $0xc8] sm:$0xff] }
  0x19   : > { %234 = vst [vmem:[%s180_s8 + $0x8] sm:$0xff] %v233_v1  ;;  %v243_v6 = vld [vmem:[%s188_s7 + $0xf0] sm:$0xff]  ;;  %v245_v7 = vld [vmem:[%s188_s7 + $0x118] sm:$0xff] }
  0x1a   : > { %236 = vst [vmem:[%s180_s8 + $0x10] sm:$0xff] %v235_v2 }
  0x1b   : > { %238 = vst [vmem:[%s180_s8 + $0x18] sm:$0xff] %v237_v3 }
  0x1c   : > { %240 = vst [vmem:[%s180_s8 + $0x20] sm:$0xff] %v239_v4 }
  0x1d   : > { %242 = vst [vmem:[%s180_s8 + $0x28] sm:$0xff] %v241_v5 }
  0x1e   : > { %244 = vst [vmem:[%s180_s8 + $0x30] sm:$0xff] %v243_v6 }
  0x1f   : > { %246 = vst [vmem:[%s180_s8 + $0x38] sm:$0xff] %v245_v7 }
  0x20 PF: > { %p794_p7 = scmp.ge.s32.totalorder %s1054_s18, 1  ;;  %p263_p8 = scmp.lt.s32.totalorder %s1054_s18, 11 }
  0x22   : > { %p264_p9 = pnand %p794_p7, %p263_p8 }
  0x23   : > { %s270_s9 = sand.u32 (!%p264_p9), 1, %s1030_s12   ;;  %s796_s10 = sshll.u32 (!%p264_p9), %s1038_s14, 5 }
  0x24   : > { %267 = sbr.rel (%p264_p9) target bundleno = 265 (0x109), region = 66  ;;  %s795_s11 = sshll.u32 (!%p264_p9), %s270_s9, 6 }
  0x25   : > { %p314_p10 = scmp.lt.s32.totalorder (!%p264_p9), %s796_s10, 159  ;;  %p326_p11 = scmp.lt.s32.totalorder (!%p264_p9), %s1042_s15, 1 }
  0x26   : > { %s1153_s30 = scalar_lea.vmem (!%p264_p9), [#allocation3], %s795_s11  ;;  %p800_p12 = scmp.ne.s32.totalorder (!%p264_p9), %s1038_s14, 0 }
  0x29   : > { %s1238_s10 = smov (!%p314_p10, %s796_s10), 159  ;;  %s1240_s15 = smov (!%p326_p11, %s1042_s15), 1 }
  0x2a   : > { %s797_s21 = sshll.u32 %s1238_s10, 2  ;;  %s900_s26 = sshll.u32 %s1240_s15, 6 }
  0x2b   : > { %s1146_s24 = scalar_lea.vmem %s1222_s1, %s797_s21  ;;  %s1151_s29 = scalar_lea.vmem %s1224_s3, %s900_s26 }
  0x2c   : > { %341 = sbr.rel (%p800_p12) target bundleno = 58 (0x3a), region = 74 }
  0x31   : > { %v1056_v8 = vmov 0.0  }
  0x32   : > { %342 = vst [vmem:[#allocation2 + $0x30] sm:$0xff] %v1056_v8 }
  0x33   : > { %343 = vst [vmem:[#allocation2] sm:$0xff] %v1056_v8 }
  0x34   : > { %344 = vst [vmem:[#allocation2 + $0x18] sm:$0xff] %v1056_v8 }
  0x35   : > { %345 = vst [vmem:[#allocation2 + $0x10] sm:$0xff] %v1056_v8 }
  0x36   : > { %346 = vst [vmem:[#allocation2 + $0x8] sm:$0xff] %v1056_v8 }
  0x37   : > { %347 = vst [vmem:[#allocation2 + $0x20] sm:$0xff] %v1056_v8 }
  0x38   : > { %348 = vst [vmem:[#allocation2 + $0x28] sm:$0xff] %v1056_v8 }
  0x39   : > { %349 = vst [vmem:[#allocation2 + $0x38] sm:$0xff] %v1056_v8 }
  0x3a PF: > { %v916_v9 = vld [vmem:[%s1146_s24 + $0x38] sm:$0xff]  ;;  %v915_v11 = vld [vmem:[%s1146_s24 + $0x30] sm:$0xff]  ;;  %v914_v13 = vld [vmem:[%s1146_s24 + $0x28] sm:$0xff]  ;;  %p897_p13 = scmp.ne.s32.totalorder %s1038_s14, 4 }
  0x3b   : > { %v924_v10 = vld [vmem:[%s1146_s24 + $0x78] sm:$0xff]  ;;  %534 = vmatpush.bf16.msra.mxu0 %v916_v9  ;;  %925 = vmatpush.bf16.msra.mxu2 %v916_v9  ;;  %v923_v12 = vld [vmem:[%s1146_s24 + $0x70] sm:$0xff]  ;;  %v922_v14 = vld [vmem:[%s1146_s24 + $0x68] sm:$0xff] }
  0x3c   : > { %563 = vmatpush.bf16.msra.mxu1 %v924_v10  ;;  %933 = vmatpush.bf16.msra.mxu3 %v924_v10  ;;  %v913_v15 = vld [vmem:[%s1146_s24 + $0x20] sm:$0xff]  ;;  %v912_v17 = vld [vmem:[%s1146_s24 + $0x18] sm:$0xff]  ;;  %v911_v19 = vld [vmem:[%s1146_s24 + $0x10] sm:$0xff] }
  0x3d   : > { %v921_v16 = vld [vmem:[%s1146_s24 + $0x60] sm:$0xff]  ;;  %v920_v18 = vld [vmem:[%s1146_s24 + $0x58] sm:$0xff]  ;;  %v919_v20 = vld [vmem:[%s1146_s24 + $0x50] sm:$0xff] }
  0x3e   : > { %v910_v21 = vld [vmem:[%s1146_s24 + $0x8] sm:$0xff]  ;;  %v909_v23 = vld [vmem:[%s1146_s24] sm:$0xff]  ;;  %v811_v37 = vld [vmem:[%s1153_s30 + $0x10] sm:$0xf] }
  0x3f   : > { %535 = vmatpush.bf16.msra.mxu0 %v915_v11  ;;  %926 = vmatpush.bf16.msra.mxu2 %v915_v11  ;;  %v918_v22 = vld [vmem:[%s1146_s24 + $0x48] sm:$0xff]  ;;  %v917_v24 = vld [vmem:[%s1146_s24 + $0x40] sm:$0xff]  ;;  %v904_v38 = vld [vmem:[%s1153_s30 + $0x14] sm:$0xf0] }
  0x40   : > { %564 = vmatpush.bf16.msra.mxu1 %v923_v12  ;;  %934 = vmatpush.bf16.msra.mxu3 %v923_v12  ;;  %v803_v25 = vld [vmem:[%s1153_s30] sm:$0xf]  ;;  %v902_v26 = vld [vmem:[%s1153_s30 + $0x4] sm:$0xf0]  ;;  %v901_v29 = vld [vmem:[%s1153_s30 + $0x4] sm:$0xf]  ;;  %v812_v45 = vor.u32 %v904_v38, %v811_v37 }
  0x41   : > { %v819_v27 = vld [vmem:[%s1153_s30 + $0x20] sm:$0xf]  ;;  %v906_v28 = vld [vmem:[%s1153_s30 + $0x24] sm:$0xf0]  ;;  %v805_v30 = vld [vmem:[%s1153_s30 + $0x8] sm:$0xf0]  ;;  %v804_v33 = vor.u32 %v902_v26, %v803_v25 }
  0x42   : > { %v905_v31 = vld [vmem:[%s1153_s30 + $0x24] sm:$0xf]  ;;  %v821_v32 = vld [vmem:[%s1153_s30 + $0x28] sm:$0xf0]  ;;  %v820_v34 = vor.u32 %v906_v28, %v819_v27  ;;  %v808_v35 = vor.u32 %v901_v29, %v805_v30  ;;  %v827_v39 = vld [vmem:[%s1153_s30 + $0x30] sm:$0xf] }
  0x43   : > { %536 = vmatpush.bf16.msra.mxu0 %v914_v13  ;;  %927 = vmatpush.bf16.msra.mxu2 %v914_v13  ;;  %v824_v36 = vor.u32 %v905_v31, %v821_v32  ;;  %v908_v40 = vld [vmem:[%s1153_s30 + $0x34] sm:$0xf0]  ;;  %v903_v41 = vld [vmem:[%s1153_s30 + $0x14] sm:$0xf]  ;;  %v813_v42 = vld [vmem:[%s1153_s30 + $0x18] sm:$0xf0] }
  0x44   : > { %565 = vmatpush.bf16.msra.mxu1 %v922_v14  ;;  %935 = vmatpush.bf16.msra.mxu3 %v922_v14  ;;  %v907_v43 = vld [vmem:[%s1153_s30 + $0x34] sm:$0xf]  ;;  %v829_v44 = vld [vmem:[%s1153_s30 + $0x38] sm:$0xf0]  ;;  %v828_v46 = vor.u32 %v908_v40, %v827_v39  ;;  %v816_v47 = vor.u32 %v903_v41, %v813_v42  ;;  %v354_v55 = vld [vmem:[#allocation2 + $0x8] sm:$0xff] }
  0x45   : > { %v832_v48 = vor.u32 %v907_v43, %v829_v44  ;;  %v350_v50 = vld [vmem:[#allocation2 + $0x30] sm:$0xff]  ;;  %v351_v59 = vld [vmem:[#allocation2] sm:$0xff]  ;;  %v352_v5 = vld [vmem:[#allocation2 + $0x18] sm:$0xff] }
  0x46   : > { %v355_v1 = vld [vmem:[#allocation2 + $0x20] sm:$0xff]  ;;  %v356_v11 = vld [vmem:[#allocation2 + $0x28] sm:$0xff] }
  0x47   : > { %537 = vmatpush.bf16.msra.mxu0 %v913_v15  ;;  %928 = vmatpush.bf16.msra.mxu2 %v913_v15  ;;  %v353_v15 = vld [vmem:[#allocation2 + $0x10] sm:$0xff] }
  0x48   : > { %566 = vmatpush.bf16.msra.mxu1 %v921_v16  ;;  %936 = vmatpush.bf16.msra.mxu3 %v921_v16 }
  0x4b   : > { %538 = vmatpush.bf16.msra.mxu0 %v912_v17  ;;  %929 = vmatpush.bf16.msra.mxu2 %v912_v17 }
  0x4c   : > { %567 = vmatpush.bf16.msra.mxu1 %v920_v18  ;;  %937 = vmatpush.bf16.msra.mxu3 %v920_v18 }
  0x4f   : > { %539 = vmatpush.bf16.msra.mxu0 %v911_v19  ;;  %930 = vmatpush.bf16.msra.mxu2 %v911_v19 }
  0x50   : > { %568 = vmatpush.bf16.msra.mxu1 %v919_v20  ;;  %938 = vmatpush.bf16.msra.mxu3 %v919_v20 }
  0x53   : > { %540 = vmatpush.bf16.msra.mxu0 %v910_v21  ;;  %931 = vmatpush.bf16.msra.mxu2 %v910_v21  ;;  %v357_v21 = vld [vmem:[#allocation2 + $0x38] sm:$0xff] }
  0x54   : > { %569 = vmatpush.bf16.msra.mxu1 %v918_v22  ;;  %939 = vmatpush.bf16.msra.mxu3 %v918_v22 }
  0x57   : > { %541 = vmatpush.bf16.msra.mxu0 %v909_v23  ;;  %932 = vmatpush.bf16.msra.mxu2 %v909_v23 }
  0x58   : > { %570 = vmatpush.bf16.msra.mxu1 %v917_v24  ;;  %940 = vmatpush.bf16.msra.mxu3 %v917_v24 }
  0x5a   : > { %542 = vmatmul.bf16.vlgmr.msra.gmra.mxu0 %v804_v33  ;;  %552 = vmatmul.bf16.vlgmr.msra.gmra.mxu2 %v820_v34 }
  0x5b   : > { %571 = vmatmul.bf16.vlgmr.msra.gmra.mxu1 %v808_v35  ;;  %581 = vmatmul.bf16.vlgmr.msra.gmra.mxu3 %v824_v36 }
  0x6a   : > { %547 = vmatmul.bf16.gmra.mxu0 %v812_v45  ;;  %557 = vmatmul.bf16.gmra.mxu2 %v828_v46 }
  0x6b   : > { %576 = vmatmul.bf16.gmra.mxu1 %v816_v47  ;;  %586 = vmatmul.bf16.gmra.mxu3 %v832_v48 }
  0xd7   : > { %v543_v49 = vpop.f32.mrf.mxu0 }
  0xd8   : > { %v572_v51 = vpop.f32.mrf.mxu1 }
  0xd9   : > { %v573_v52 = vadd.f32 %v572_v51, %v543_v49 }
  0xdb   : > { %v592_v53 = vadd.f32 %v573_v52, %v350_v50 }
  0xdd   : > { %600 = vst [vmem:[#allocation2 + $0x30] sm:$0xff] %v592_v53  ;;  %v553_v54 = vpop.f32.mrf.mxu2 }
  0xde   : > { %v582_v56 = vpop.f32.mrf.mxu3 }
  0xdf   : > { %v583_v57 = vadd.f32 %v582_v56, %v553_v54  ;;  %v545_v58 = vpop.f32.mrf.mxu0 }
  0xe0   : > { %v574_v60 = vpop.f32.mrf.mxu1 }
  0xe1   : > { %v596_v61 = vadd.f32 %v583_v57, %v354_v55  ;;  %v575_v62 = vadd.f32 %v574_v60, %v545_v58 }
  0xe3   : > { %604 = vst [vmem:[#allocation2 + $0x8] sm:$0xff] %v596_v61  ;;  %v593_v63 = vadd.f32 %v575_v62, %v351_v59 }
  0xe5   : > { %601 = vst [vmem:[#allocation2] sm:$0xff] %v593_v63  ;;  %v555_v0 = vpop.f32.mrf.mxu2 }
  0xe6   : > { %v584_v2 = vpop.f32.mrf.mxu3 }
  0xe7   : > { %v585_v3 = vadd.f32 %v584_v2, %v555_v0  ;;  %v548_v4 = vpop.f32.mrf.mxu0 }
  0xe8   : > { %v577_v6 = vpop.f32.mrf.mxu1 }
  0xe9   : > { %v597_v7 = vadd.f32 %v585_v3, %v355_v1  ;;  %v578_v8 = vadd.f32 %v577_v6, %v548_v4 }
  0xeb   : > { %605 = vst [vmem:[#allocation2 + $0x20] sm:$0xff] %v597_v7  ;;  %v594_v9 = vadd.f32 %v578_v8, %v352_v5 }
  0xed   : > { %602 = vst [vmem:[#allocation2 + $0x18] sm:$0xff] %v594_v9  ;;  %v558_v10 = vpop.f32.mrf.mxu2 }
  0xee   : > { %v587_v12 = vpop.f32.mrf.mxu3 }
  0xef   : > { %v588_v13 = vadd.f32 %v587_v12, %v558_v10  ;;  %v550_v14 = vpop.f32.mrf.mxu0 }
  0xf0   : > { %v579_v16 = vpop.f32.mrf.mxu1 }
  0xf1   : > { %v598_v17 = vadd.f32 %v588_v13, %v356_v11  ;;  %v580_v18 = vadd.f32 %v579_v16, %v550_v14 }
  0xf3   : > { %606 = vst [vmem:[#allocation2 + $0x28] sm:$0xff] %v598_v17  ;;  %v595_v19 = vadd.f32 %v580_v18, %v353_v15 }
  0xf5   : > { %603 = vst [vmem:[#allocation2 + $0x10] sm:$0xff] %v595_v19  ;;  %v560_v20 = vpop.f32.mrf.mxu2 }
  0xf6   : > { %v589_v22 = vpop.f32.mrf.mxu3 }
  0xf7   : > { %v590_v23 = vadd.f32 %v589_v22, %v560_v20  ;;  %611 = sbr.rel (%p897_p13) target bundleno = 265 (0x109), region = 78 }
  0xf9   : > { %v599_v24 = vadd.f32 %v590_v23, %v357_v21 }
  0xfb   : > { %607 = vst [vmem:[#allocation2 + $0x38] sm:$0xff] %v599_v24 }
  0xfc   : > { %v612_v25 = vld [vmem:[#allocation2 + $0x30] sm:$0xff]  ;;  %v999_v26 = vld [vmem:[%s1223_s2] ss:$0 sm:$0xff]  ;;  %v614_v28 = vld [vmem:[#allocation2 + $0x18] sm:$0xff] }
  0xfd   : > { %v613_v27 = vld [vmem:[#allocation2] sm:$0xff]  ;;  %v615_v29 = vld [vmem:[#allocation2 + $0x10] sm:$0xff]  ;;  %v624_v30 = vadd.f32 %v999_v26, %v612_v25  ;;  %v626_v32 = vadd.f32 %v999_v26, %v614_v28  ;;  %v616_v34 = vld [vmem:[#allocation2 + $0x8] sm:$0xff] }
  0xfe   : > { %v625_v31 = vadd.f32 %v999_v26, %v613_v27  ;;  %v627_v33 = vadd.f32 %v999_v26, %v615_v29  ;;  %v617_v35 = vld [vmem:[#allocation2 + $0x20] sm:$0xff]  ;;  %v618_v36 = vld [vmem:[#allocation2 + $0x28] sm:$0xff]  ;;  %v628_v37 = vadd.f32 %v999_v26, %v616_v34 }
  0xff   : > { %v629_v38 = vadd.f32 %v999_v26, %v617_v35  ;;  %v632_v40 = vmax.f32 %v624_v30, 0.0  ;;  %v634_v42 = vmax.f32 %v626_v32, 0.0  ;;  %v630_v43 = vadd.f32 %v999_v26, %v618_v36 }
 0x100   : > { %v633_v41 = vmax.f32 %v625_v31, 0.0  ;;  %v635_v44 = vmax.f32 %v627_v33, 0.0  ;;  %v636_v46 = vmax.f32 %v628_v37, 0.0 }
 0x101   : > { %640 = vst [vmem:[%s1151_s29] sm:$0xff] %v632_v40  ;;  %v637_v47 = vmax.f32 %v629_v38, 0.0  ;;  %v638_v48 = vmax.f32 %v630_v43, 0.0 }
 0x102   : > { %v619_v39 = vld [vmem:[#allocation2 + $0x38] sm:$0xff]  ;;  %641 = vst [vmem:[%s1151_s29 + $0x8] sm:$0xff] %v633_v41 }
 0x103   : > { %v631_v45 = vadd.f32 %v999_v26, %v619_v39  ;;  %642 = vst [vmem:[%s1151_s29 + $0x10] sm:$0xff] %v634_v42 }
 0x104   : > { %643 = vst [vmem:[%s1151_s29 + $0x18] sm:$0xff] %v635_v44 }
 0x105   : > { %v639_v49 = vmax.f32 %v631_v45, 0.0  ;;  %644 = vst [vmem:[%s1151_s29 + $0x20] sm:$0xff] %v636_v46 }
 0x106   : > { %645 = vst [vmem:[%s1151_s29 + $0x28] sm:$0xff] %v637_v47 }
 0x107   : > { %646 = vst [vmem:[%s1151_s29 + $0x30] sm:$0xff] %v638_v48 }
 0x108   : > { %647 = vst [vmem:[%s1151_s29 + $0x38] sm:$0xff] %v639_v49 }
 0x109 PF: > { %s13_s18 = sadd.s32 1, %s1054_s18   ;;  %s1225_s12 = smov %s1034_s13 }
 0x10a   : > { %p10_p0 = scmp.ge.s32.totalorder %s13_s18, 12   ;;  %s1226_s13 = smov %s1128_s25 }
 0x10b   : > { %s1227_s14 = smov %s1046_s16  ;;  %s1228_s15 = smov %s1050_s17 }
 0x10c   : > { %s1229_s16 = smov %s1232_s19  ;;  %s1230_s17 = smov %s1236_s20 }
 0x10d   :  { %12 = sbr.rel (!%p10_p0) target bundleno = 4 (0x4), region = 119 }

</bundles_post_ra>
